<compile_context>
chip_gen: v5e
topology: v5e:2x2
jax: 0.10.0
libtpu: 0.0.40
codegen_flags: <defaults>
</compile_context>

<pallas_src>
import functools

import jax
import jax.numpy as jnp
import numpy as np
from jax.experimental import pallas as pl
from jax.experimental.pallas import tpu as pltpu

N_SHIFT = 23  # self.n in the PyTorch module


def _int_exp_shift_main(x_int_f32, x0):
    """int_exp_shift on the (TM, H) tile. Here x_int <= 0, so q is in [0, 23]
    and 2**(23 - q) can be built with an integer ldexp (off the EUP slot)."""
    xi = x_int_f32.astype(jnp.int32)            # trunc toward zero == torch .to(int32)
    xi = xi + (xi >> 1) - (xi >> 4)             # x + floor(x/2) - floor(x/16), exact
    xf = jnp.maximum(xi.astype(jnp.float32), jnp.float32(N_SHIFT) * x0)
    q = jnp.floor(xf / x0)                      # integral, in [0, 23]
    r = xf - x0 * q
    exp_base = r * jnp.float32(0.5) - x0        # r/2 - x0
    # 2**(23 - q): exponent field = (23 - q) + 127, safe since q in [0, 23]
    pow2_bits = (jnp.int32(N_SHIFT + 127) - q.astype(jnp.int32)) << 23
    pow2 = pltpu.bitcast(pow2_bits, jnp.float32)
    return jnp.maximum(jnp.floor(exp_base * pow2), jnp.float32(0.0))


def _int_exp_shift_col(x_int_f32, x0):
    """int_exp_shift on the (TM, 1) column (-x_int_max): q may be negative, so
    keep the generic exp2 path (only 1/H of the elements -> negligible)."""
    xi = x_int_f32.astype(jnp.int32)
    xi = xi + (xi >> 1) - (xi >> 4)
    xf = jnp.maximum(xi.astype(jnp.float32), jnp.float32(N_SHIFT) * x0)
    q = jnp.floor(xf / x0)
    r = xf - x0 * q
    exp_base = r * jnp.float32(0.5) - x0
    return jnp.maximum(jnp.floor(exp_base * jnp.exp2(jnp.float32(N_SHIFT) - q)),
                       jnp.float32(0.0))


def _intgelu_kernel(sf_ref, x_ref, out_ref, *, output_bit):
    sf = sf_ref[0]                              # scalar scaling factor (SMEM)
    inv_sf = jnp.float32(1.0) / sf              # one scalar reciprocal per tile

    x = x_ref[...]
    pre_x_int = x * inv_sf                      # x / scaling_factor
    x_int_max = jnp.max(pre_x_int, axis=-1, keepdims=True)
    x_int = pre_x_int - x_int_max               # <= 0

    sig_scale = sf * jnp.float32(1.702)
    x0 = jnp.floor(jnp.float32(-1.0) / sig_scale)   # scalar, <= -1

    exp_int = _int_exp_shift_main(x_int, x0)
    exp_int_max = _int_exp_shift_col(-x_int_max, x0)

    # 2**31 - 1 rounds to 2**31 in f32 (same as the torch float path).
    max_i32 = jnp.float32(2 ** 31 - 1)
    exp_sum = jnp.minimum(exp_int + exp_int_max, max_i32)   # clamp_max(2**31 - 1)
    factor = jnp.floor(max_i32 / exp_sum)                   # must stay a true divide
    sigmoid_int = jnp.floor(exp_int * factor *
                            jnp.float32(2.0 ** -(31 - output_bit + 1)))

    # out_int * out_scale == (x/sf) * sigmoid_int * (sf / 2**(b-1))
    #                     == x * sigmoid_int * 2**-(b-1)   (sf cancels exactly)
    out = x * sigmoid_int * jnp.float32(2.0 ** -(output_bit - 1))
    out_ref[...] = out.astype(out_ref.dtype)


def _vmem_capacity_bytes():
    try:
        info = pltpu.get_tpu_info()
        for name in ("vmem_capacity_bytes", "vmem_bytes", "vmem_size_bytes"):
            v = getattr(info, name, None)
            if v:
                return int(v)
    except Exception:
        pass
    return 64 * 1024 * 1024      # conservative fallback (v7x per-TensorCore VMEM)


def _choose_tile_rows(M, H, vmem_bytes):
    """Largest row tile whose working set fits comfortably in VMEM, while keeping
    the grid at >= 2 steps (so both v7x TensorCores get rows)."""
    budget = max(4 << 20, int(vmem_bytes * 0.45))
    slab = 10 * H * 4            # 2 I/O arrays x 2 pipeline bufs + ~6 live f32 temps
    tm_cap = max(8, min(1024, (budget // slab) // 8 * 8))
    m_pad8 = -(-M // 8) * 8
    if m_pad8 <= 8:
        return 8
    n_tiles = max(2, -(-m_pad8 // tm_cap))
    per_tile = -(-m_pad8 // n_tiles)
    tm = -(-per_tile // 8) * 8
    return max(8, min(tm, tm_cap))


def int_gelu_ivit(x, scaling_factor, *, output_bit=8):
    """JAX/Pallas equivalent of IntGELU_IViT.forward.

    Args:
      x: float array of shape (..., H); reduction runs over the last axis.
      scaling_factor: shape-(1,) (or scalar) float array.
    Returns:
      (out, out_scale): out has the same shape as x (float32);
      out_scale = scaling_factor / 2**(output_bit - 1).
    """
    x = jnp.asarray(x, jnp.float32)
    sf_arr = jnp.reshape(jnp.asarray(scaling_factor, jnp.float32), (1,))

    orig_shape = x.shape
    H = int(orig_shape[-1])
    M = int(np.prod(orig_shape[:-1])) if len(orig_shape) > 1 else 1
    x2 = x.reshape(M, H)

    vmem_cap = _vmem_capacity_bytes()
    TM = _choose_tile_rows(M, H, vmem_cap)
    M_pad = -(-M // TM) * TM
    if M_pad != M:
        # Rows are independent; zero rows are numerically safe and discarded below.
        x2 = jnp.pad(x2, ((0, M_pad - M), (0, 0)))

    grid = (M_pad // TM,)
    kernel = functools.partial(_intgelu_kernel, output_bit=output_bit)
    vmem_limit = int(min(int(vmem_cap * 0.75), 100 * 1024 * 1024))

    out2 = pl.pallas_call(
        kernel,
        out_shape=jax.ShapeDtypeStruct((M_pad, H), jnp.float32),
        grid_spec=pltpu.PrefetchScalarGridSpec(
            num_scalar_prefetch=0,
            grid=grid,
            in_specs=[
                pl.BlockSpec(memory_space=pltpu.MemorySpace.SMEM),  # scaling factor
                pl.BlockSpec((TM, H), lambda i: (i, 0)),            # row tile of x
            ],
            out_specs=pl.BlockSpec((TM, H), lambda i: (i, 0)),
        ),
        compiler_params=pltpu.CompilerParams(
            dimension_semantics=("parallel",),
            vmem_limit_bytes=vmem_limit),
    )(sf_arr, x2)

    out = out2[:M].reshape(orig_shape)
    out_scale = sf_arr * jnp.float32(1.0 / 2 ** (output_bit - 1))
    return out, out_scale


if __name__ == "__main__":
    key = jax.random.PRNGKey(0)
    kx, _ = jax.random.split(key)

    # batch=2, seq=8, hidden=32 ; reduction over hidden (last axis)
    x = jax.random.normal(kx, (2, 8, 32), dtype=jnp.float32) * 2.0
    scaling_factor = jnp.array([0.05], dtype=jnp.float32)

    out, out_scale = int_gelu_ivit(x, scaling_factor, output_bit=8)
    jax.block_until_ready(out)
    jax.block_until_ready(out_scale)
    print("KERNEL_OK")
</pallas_src>

<mosaic_0001>
module attributes {stable_mosaic.version = 11 : i64} {
  func.func @_intgelu_kernel(%arg0: i32, %arg1: memref<1xf32, #tpu.memory_space<smem>>, %arg2: memref<8x32xf32, #tpu.memory_space<vmem>>, %arg3: memref<8x32xf32, #tpu.memory_space<vmem>>) attributes {dimension_semantics = [#tpu.dimension_semantics<parallel>], iteration_bounds = array<i64: 2>, scalar_prefetch = 0 : i64, scratch_operands = 0 : i64, tpu.core_type = #tpu.core_type<tc>, window_params = [{transform_indices = @transform_0, window_bounds = array<i64: 1>}, {transform_indices = @transform_1, window_bounds = array<i64: 8, 32>}, {transform_indices = @transform_2, window_bounds = array<i64: 8, 32>}]} {
    %c0 = arith.constant 0 : index
    %0 = memref.load %arg1[%c0] : memref<1xf32, #tpu.memory_space<smem>>
    %cst = arith.constant 1.000000e+00 : f32
    %1 = arith.divf %cst, %0 : f32
    %c0_0 = arith.constant 0 : index
    %c0_1 = arith.constant 0 : index
    %2 = vector.load %arg2[%c0_0, %c0_1] : memref<8x32xf32, #tpu.memory_space<vmem>>, vector<8x32xf32>
    %3 = vector.broadcast %1 : f32 to vector<8x32xf32>
    %4 = arith.mulf %2, %3 : vector<8x32xf32>
    %cst_2 = arith.constant dense<0xFF800000> : vector<8xf32>
    %5 = vector.multi_reduction <maximumf>, %4, %cst_2 [1] : vector<8x32xf32> to vector<8xf32>
    %6 = vector.shape_cast %5 : vector<8xf32> to vector<8x1xf32>
    %7 = vector.broadcast %6 : vector<8x1xf32> to vector<8x32xf32>
    %8 = arith.subf %4, %7 : vector<8x32xf32>
    %cst_3 = arith.constant 1.702000e+00 : f32
    %9 = arith.mulf %0, %cst_3 : f32
    %cst_4 = arith.constant -1.000000e+00 : f32
    %10 = arith.divf %cst_4, %9 : f32
    %11 = math.floor %10 : f32
    %12 = arith.fptosi %8 : vector<8x32xf32> to vector<8x32xi32>
    %c1_i32 = arith.constant 1 : i32
    %13 = vector.broadcast %c1_i32 : i32 to vector<8x32xi32>
    %14 = arith.shrsi %12, %13 : vector<8x32xi32>
    %15 = arith.addi %12, %14 : vector<8x32xi32>
    %c4_i32 = arith.constant 4 : i32
    %16 = vector.broadcast %c4_i32 : i32 to vector<8x32xi32>
    %17 = arith.shrsi %12, %16 : vector<8x32xi32>
    %18 = arith.subi %15, %17 : vector<8x32xi32>
    %19 = arith.sitofp %18 : vector<8x32xi32> to vector<8x32xf32>
    %cst_5 = arith.constant 2.300000e+01 : f32
    %20 = arith.mulf %cst_5, %11 : f32
    %21 = vector.broadcast %20 : f32 to vector<8x32xf32>
    %22 = arith.maximumf %19, %21 : vector<8x32xf32>
    %23 = vector.broadcast %11 : f32 to vector<8x32xf32>
    %24 = arith.divf %22, %23 : vector<8x32xf32>
    %25 = math.floor %24 : vector<8x32xf32>
    %26 = vector.broadcast %11 : f32 to vector<8x32xf32>
    %27 = arith.mulf %26, %25 : vector<8x32xf32>
    %28 = arith.subf %22, %27 : vector<8x32xf32>
    %cst_6 = arith.constant 5.000000e-01 : f32
    %29 = vector.broadcast %cst_6 : f32 to vector<8x32xf32>
    %30 = arith.mulf %28, %29 : vector<8x32xf32>
    %31 = vector.broadcast %11 : f32 to vector<8x32xf32>
    %32 = arith.subf %30, %31 : vector<8x32xf32>
    %33 = arith.fptosi %25 : vector<8x32xf32> to vector<8x32xi32>
    %c150_i32 = arith.constant 150 : i32
    %34 = vector.broadcast %c150_i32 : i32 to vector<8x32xi32>
    %35 = arith.subi %34, %33 : vector<8x32xi32>
    %c23_i32 = arith.constant 23 : i32
    %36 = vector.broadcast %c23_i32 : i32 to vector<8x32xi32>
    %37 = arith.shli %35, %36 : vector<8x32xi32>
    %38 = tpu.bitcast %37 : vector<8x32xi32> -> vector<8x32xf32>
    %39 = arith.mulf %32, %38 : vector<8x32xf32>
    %40 = math.floor %39 : vector<8x32xf32>
    %cst_7 = arith.constant 0.000000e+00 : f32
    %41 = vector.broadcast %cst_7 : f32 to vector<8x32xf32>
    %42 = arith.maximumf %40, %41 : vector<8x32xf32>
    %cst_8 = arith.constant 0.000000e+00 : f32
    %43 = vector.broadcast %cst_8 : f32 to vector<8x1xf32>
    %44 = arith.subf %43, %6 : vector<8x1xf32>
    %45 = arith.fptosi %44 : vector<8x1xf32> to vector<8x1xi32>
    %c1_i32_9 = arith.constant 1 : i32
    %46 = vector.broadcast %c1_i32_9 : i32 to vector<8x1xi32>
    %47 = arith.shrsi %45, %46 : vector<8x1xi32>
    %48 = arith.addi %45, %47 : vector<8x1xi32>
    %c4_i32_10 = arith.constant 4 : i32
    %49 = vector.broadcast %c4_i32_10 : i32 to vector<8x1xi32>
    %50 = arith.shrsi %45, %49 : vector<8x1xi32>
    %51 = arith.subi %48, %50 : vector<8x1xi32>
    %52 = arith.sitofp %51 : vector<8x1xi32> to vector<8x1xf32>
    %cst_11 = arith.constant 2.300000e+01 : f32
    %53 = arith.mulf %cst_11, %11 : f32
    %54 = vector.broadcast %53 : f32 to vector<8x1xf32>
    %55 = arith.maximumf %52, %54 : vector<8x1xf32>
    %56 = vector.broadcast %11 : f32 to vector<8x1xf32>
    %57 = arith.divf %55, %56 : vector<8x1xf32>
    %58 = math.floor %57 : vector<8x1xf32>
    %59 = vector.broadcast %11 : f32 to vector<8x1xf32>
    %60 = arith.mulf %59, %58 : vector<8x1xf32>
    %61 = arith.subf %55, %60 : vector<8x1xf32>
    %cst_12 = arith.constant 5.000000e-01 : f32
    %62 = vector.broadcast %cst_12 : f32 to vector<8x1xf32>
    %63 = arith.mulf %61, %62 : vector<8x1xf32>
    %64 = vector.broadcast %11 : f32 to vector<8x1xf32>
    %65 = arith.subf %63, %64 : vector<8x1xf32>
    %cst_13 = arith.constant 2.300000e+01 : f32
    %66 = vector.broadcast %cst_13 : f32 to vector<8x1xf32>
    %67 = arith.subf %66, %58 : vector<8x1xf32>
    %68 = math.exp2 %67 : vector<8x1xf32>
    %69 = arith.mulf %65, %68 : vector<8x1xf32>
    %70 = math.floor %69 : vector<8x1xf32>
    %cst_14 = arith.constant 0.000000e+00 : f32
    %71 = vector.broadcast %cst_14 : f32 to vector<8x1xf32>
    %72 = arith.maximumf %70, %71 : vector<8x1xf32>
    %73 = vector.broadcast %72 : vector<8x1xf32> to vector<8x32xf32>
    %74 = arith.addf %42, %73 : vector<8x32xf32>
    %cst_15 = arith.constant 2.14748365E+9 : f32
    %75 = vector.broadcast %cst_15 : f32 to vector<8x32xf32>
    %76 = arith.minimumf %74, %75 : vector<8x32xf32>
    %cst_16 = arith.constant 2.14748365E+9 : f32
    %77 = vector.broadcast %cst_16 : f32 to vector<8x32xf32>
    %78 = arith.divf %77, %76 : vector<8x32xf32>
    %79 = math.floor %78 : vector<8x32xf32>
    %80 = arith.mulf %42, %79 : vector<8x32xf32>
    %cst_17 = arith.constant 5.96046448E-8 : f32
    %81 = vector.broadcast %cst_17 : f32 to vector<8x32xf32>
    %82 = arith.mulf %80, %81 : vector<8x32xf32>
    %83 = math.floor %82 : vector<8x32xf32>
    %84 = arith.mulf %2, %83 : vector<8x32xf32>
    %cst_18 = arith.constant 7.812500e-03 : f32
    %85 = vector.broadcast %cst_18 : f32 to vector<8x32xf32>
    %86 = arith.mulf %84, %85 : vector<8x32xf32>
    %c0_19 = arith.constant 0 : index
    %c0_20 = arith.constant 0 : index
    %87 = vector.load %arg3[%c0_19, %c0_20] : memref<8x32xf32, #tpu.memory_space<vmem>>, vector<8x32xf32>
    tpu.vector_store %arg3[%c0_19, %c0_20], %86 {strides = array<i32>} : memref<8x32xf32, #tpu.memory_space<vmem>>, vector<8x32xf32>,
    return
  }
  func.func @transform_0(%arg0: i32) -> i32 {
    %c0_i32 = arith.constant 0 : i32
    %c0_i32_0 = arith.constant 0 : i32
    return %c0_i32 : i32
  }
  func.func @transform_1(%arg0: i32) -> (i32, i32) {
    %c0_i32 = arith.constant 0 : i32
    %c0_i32_0 = arith.constant 0 : i32
    return %arg0, %c0_i32 : i32, i32
  }
  func.func @transform_2(%arg0: i32) -> (i32, i32) {
    %c0_i32 = arith.constant 0 : i32
    %c0_i32_0 = arith.constant 0 : i32
    return %arg0, %c0_i32 : i32, i32
  }
}

</mosaic_0001>

<bundles_post_ra>
// kernel: tpu_custom_call.1
= control target key start
LH: loop header
LB: loop body
LE: loop exit
PB: predicated region body
PF: predicated region fallthrough
CT: control target
= control target key end

     0   :  { %s727_s0 = inlined_call_operand.<no memory space> [shape: f32[1], index: 0, kind: input, shape index: {}]   ;;  %s728_s1 = inlined_call_operand.hbm [shape: f32[16,32], index: 1, kind: input, shape index: {}]   ;;  %s729_s2 = inlined_call_operand.hbm [shape: f32[16,32], index: 2, kind: output, shape index: {}]  }
   0x1   :  { %7 = sst [smem:[#allocation2]] %s727_s0 }
   0x2   :  { %8 = vsyncpa [#allocation4], 0 }
   0x3   :  { %10 = vsyncpa [#allocation4 + $0x1], 0 }
   0x4   :  { %11 = vsyncpa [#allocation5], 0 }
   0x5   :  { %13 = vsyncpa [#allocation5 + $0x1], 0  ;;  %s572_s11 = smov 0   ;;  %s574_s12 = smov 0  }
   0x6   :  { %s576_s13 = smov 0   ;;  %s578_s14 = smov 0  }
   0x7 LB: > { %s593_s0 = sadd.s32 4294967295, %s552_s14   ;;  %s372_s15 = sadd.s32 4294967294, %s552_s14   ;;  %s552_s14 = sphi %s578_s14, %s739_s14   ;;  %s548_s13 = sphi %s576_s13, %s738_s13   ;;  %s544_s12 = sphi %s574_s12, %s737_s12   ;;  %s540_s11 = sphi %s572_s11, %s736_s11  }
   0x8   : > { %s597_s16 = sadd.s32 1, %s552_s14   ;;  %s47_s17 = sadd.s32 1, %s548_s13 }
   0x9   : > { %s44_s18 = ssub.s32 %s552_s14, %s597_s16  ;;  %p54_p0 = scmp.ne.s32.totalorder %s548_s13, %s544_s12 }
   0xa   : > { %p45_p1 = scmp.eq.s32.totalorder %s44_s18, 0  ;;  %p55_p2 = scmp.eq.s32.totalorder %s552_s14, 0 }
   0xb   : > { %p60_p3 = scmp.ne.s32.totalorder %s544_s12, %s540_s11  ;;  %p61_p4 = scmp.eq.s32.totalorder %s593_s0, 0 }
   0xc   : > { %s609_s19 = scalar_select %p45_p1, %s548_s13, %s47_s17  }
   0xd   : > { %p611_p5 = por %p55_p2, %p54_p0  ;;  %p615_p6 = por %p61_p4, %p60_p3 }
   0xe   : > { %p84_p7 = scmp.eq.s32.totalorder %s593_s0, 1  ;;  %p90_p8 = scmp.eq.s32.totalorder %s372_s15, 1 }
   0xf   : > { %p412_p10 = scmp.lt.s32.totalorder %s552_s14, 2  ;;  %s113_s24 = sand.u32 1, %s548_s13  }
  0x10   : > { %p622_p11 = por %p84_p7, %p54_p0  ;;  %p626_p12 = por %p90_p8, %p60_p3 }
  0x11   : > { %s376_s25 = sshll.u32 %s552_s14, 3  ;;  %s375_s26 = sshll.u32 %s113_s24, 3 }
  0x12   : > { %s121_s29 = scalar_lea.hbm %s728_s1, %s376_s25  ;;  %s117_s3 = scalar_lea.vmem [#allocation3], %s375_s26 }
  0x13   : > { %s123_s30 = sshll.u32 %s121_s29, 4  ;;  %s125_s4 = sshll.u32 %s117_s3, 4  ;;  %s124_s30 = int_to_ptr.hbm [resolvable:$true] %s123_s30  ;;  %s126_s4 = int_to_ptr.vmem [resolvable:$true] %s125_s4 }
  0x14   : > { %p637_p13 = pnand %p412_p10, %p611_p5  ;;  %p377_p0 = scmp.ge.s32.totalorder %s552_s14, 1 }
  0x15   : > { %p130_p1 = scmp.lt.s32.totalorder %s552_s14, 3  ;;  %s114_s6 = scalar_lea.sflag [#allocation4], %s113_s24 }
  0x16   : > { %s456_s7 = sshra.s32 %s124_s30, 4  ;;  %p460_p3 = pneg %p637_p13  ;;  %s457_s7 = int_to_ptr.hbm [resolvable:$true] %s456_s7 }
  0x17   : > { %s458_s8 = scalar_lea.hbm %s457_s7, 8  ;;  %s463_s15 = scalar_lea.hbm %s728_s1, 16 }
  0x18   : > { %p459_p2 = scmp.ne.s32.totalorder %s457_s7, %s458_s8  ;;  %p464_p5 = scmp.lt.s32.totalorder %s457_s7, %s728_s1 }
  0x19   : > { %p465_p8 = scmp.lt.s32.totalorder %s463_s15, %s458_s8 }
  0x1a   : > { %p461_p4 = pnand %p460_p3, %p459_p2 }
  0x1b   : > { %p466_p10 = por %p465_p8, %p464_p5 }
  0x1c   : > { %p462_p7 = pneg %p461_p4 }
  0x1e   : > { %p467_p9 = pnand %p466_p10, %p462_p7 }
  0x20   : > { %470 = shalt.err (!%p467_p9)
}
  0x21   : > { %407 = dma.hbm_to_vmem [thread:$0]  (!%p637_p13), %s124_s30, 128, %s126_s4, %s114_s6  }
  0x22   : > { %p131_p2 = pnand %p377_p0, %p130_p1 }
  0x23   : > { %s658_s20 = sand.u32 (!%p131_p2), 1, %s544_s12  }
  0x24   : > { %134 = sbr.rel (%p131_p2) target bundleno = 311 (0x137), region = 28  ;;  %s378_s24 = sshll.u32 (!%p131_p2), %s658_s20, 3 }
  0x25   : > { %s137_s25 = scalar_lea.sflag (!%p131_p2), [#allocation4], %s658_s20  ;;  %s664_s26 = scalar_lea.vmem (!%p131_p2), [#allocation3], %s378_s24 }
  0x29   : > { %531 = dma.done.wait (%p615_p6), %s137_s25, 128  }
  0x2a   : > { %533 = vsyncadd (%p615_p6), %s137_s25, 4294967168  ;;  %s162_s27 = sld [smem:[#allocation2]]  ;;  %v671_v22 = vld [vmem:[%s664_s26] sm:$0xff]  ;;  %vm182_vm8 = vcmask 261120   ;;  %s381_s5 = sshll.u32 %s593_s0, 3 }
  0x2b   : > { %s297_s8 = scalar_lea.hbm %s729_s2, %s381_s5  ;;  %s161_s9 = scalar_lea.vmem [#allocation6], %s378_s24 }
  0x2c   : > { %s299_s10 = sshll.u32 %s161_s9, 4  ;;  %s301_s15 = sshll.u32 %s297_s8, 4  ;;  %s300_s10 = int_to_ptr.vmem [resolvable:$true] %s299_s10  ;;  %s302_s15 = int_to_ptr.hbm [resolvable:$true] %s301_s15 }
  0x2d   : > { %s287_s0 = scalar_lea.sflag [#allocation5], %s658_s20  ;;  %s500_s17 = sshra.s32 %s302_s15, 4  ;;  %s501_s17 = int_to_ptr.hbm [resolvable:$true] %s500_s17 }
  0x2e   : > { %s502_s18 = scalar_lea.hbm %s501_s17, 8  ;;  %s506_s24 = scalar_lea.hbm %s729_s2, 16 }
  0x2f   : > { %p503_p6 = scmp.ne.s32.totalorder %s501_s17, %s502_s18  ;;  %p507_p0 = scmp.lt.s32.totalorder %s501_s17, %s729_s2 }
  0x30   : > { %v163_v0 = vstv %s162_s27  ;;  %s187_s21 = smul.f32 1.702, %s162_s27  ;;  %p508_p1 = scmp.lt.s32.totalorder %s506_s24, %s502_s18 }
  0x31   : > { %446 = vrcp.f32 %v163_v0  ;;  %v175_v3 = vand.u32 2147483648, %v163_v0  ;;  %vm169_vm0 = vweird.f32 %v163_v0  ;;  %v173_v5 = vand.u32 2147483647, %v163_v0  ;;  %p504_p9 = pnand %p503_p6, %p622_p11 }
  0x32   : > { %v188_v11 = vstv %s187_s21  ;;  %p509_p3 = por %p508_p1, %p507_p0 }
  0x33   : > { %v176_v7 = vor.u32 1.1754944e-38, %v175_v3  ;;  %vm174_vm3 = vcmp.eq.f32.partialorder %v173_v5, 8.507059e+37  ;;  %448 = vrcp.f32 %v188_v11  ;;  %v200_v14 = vand.u32 2147483648, %v188_v11  ;;  %p505_p13 = pneg %p504_p9 }
  0x34   : > { %vm194_vm4 = vweird.f32 %v188_v11  ;;  %v198_v16 = vand.u32 2147483647, %v188_v11 }
  0x35   : > { %v201_v18 = vor.u32 1.1754944e-38, %v200_v14  ;;  %p510_p4 = pnand %p509_p3, %p505_p13 }
  0x36   : > { %vm199_vm7 = vcmp.eq.f32.partialorder %v198_v16, 8.507059e+37 }
  0x37   : > { %v447_v1 = vpop.eup %446 }
  0x38   : > { %v165_v2 = vmul.f32 %v447_v1, %v163_v0  ;;  %vm170_vm1 = vweird.f32 %v447_v1 }
  0x39   : > { %vm171_vm2 = vmor %vm169_vm0, %vm170_vm1  ;;  %v449_v12 = vpop.eup %448 }
  0x3a   : > { %v166_v4 = vsub.f32 1.0, %v165_v2  ;;  %v190_v13 = vmul.f32 %v449_v12, %v188_v11  ;;  %vm195_vm5 = vweird.f32 %v449_v12 }
  0x3b   : > { %vm196_vm6 = vmor %vm194_vm4, %vm195_vm5 }
  0x3c   : > { %v167_v6 = vmul.f32 %v447_v1, %v166_v4  ;;  %v191_v15 = vsub.f32 1.0, %v190_v13 }
  0x3e   : > { %v168_v8 = vadd.f32 %v447_v1, %v167_v6  ;;  %v192_v17 = vmul.f32 %v449_v12, %v191_v15 }
  0x40   : > { %v172_v9 = vsel %vm171_vm2, %v447_v1, %v168_v8  ;;  %v193_v19 = vadd.f32 %v449_v12, %v192_v17 }
  0x41   : > { %v177_v10 = vsel %vm174_vm3, %v176_v7, %v172_v9 }
  0x42   : > { %384 = vpush %v177_v10  ;;  %v197_v20 = vsel %vm196_vm6, %v449_v12, %v193_v19 }
  0x43   : > { %v202_v21 = vsel %vm199_vm7, %v201_v18, %v197_v20 }
  0x44   : > { %386 = vpush %v202_v21 }
  0x73   : > { %s385_s28 = spop %384 }
  0x74   : > { %v180_v23 = vstv %s385_s28 }
  0x75   : > { %v181_v24 = vmul.f32 %v180_v23, %v671_v22  ;;  %s387_s29 = spop %386 }
  0x76   : > { %s204_s30 = smul.f32 -1.0, %s387_s29 }
  0x77   : > { %v183_v25 = vsel %vm182_vm8, %v181_v24, -inf }
  0x78   : > { %184 = vmax.xlane.f32.xlu0 %v183_v25  ;;  %s675_s3 = sfloor.f32 %s204_s30 }
  0x79   : > { %v678_v26 = vstv %s675_s3  ;;  %s212_s4 = smul.f32 23.0, %s675_s3 }
  0x7a   : > { %450 = vrcp.f32 %v678_v26  ;;  %vm221_vm11 = vweird.f32 %v678_v26  ;;  %v227_v43 = vand.u32 2147483648, %v678_v26  ;;  %v225_v46 = vand.u32 2147483647, %v678_v26 }
  0x7b   : > { %v213_v56 = vstv %s212_s4 }
  0x7c   : > { %v228_v52 = vor.u32 1.1754944e-38, %v227_v43  ;;  %vm226_vm14 = vcmp.eq.f32.partialorder %v225_v46, 8.507059e+37 }
  0x80   : > { %v451_v27 = vpop.eup %450 }
  0x81   : > { %v217_v28 = vmul.f32 %v451_v27, %v678_v26  ;;  %vm222_vm12 = vweird.f32 %v451_v27 }
  0x82   : > { %vm223_vm13 = vmor %vm221_vm11, %vm222_vm12 }
  0x83   : > { %v218_v32 = vsub.f32 1.0, %v217_v28 }
  0x85   : > { %v219_v38 = vmul.f32 %v451_v27, %v218_v32 }
  0x87   : > { %v220_v45 = vadd.f32 %v451_v27, %v219_v38 }
  0x89   : > { %v224_v55 = vsel %vm223_vm13, %v451_v27, %v220_v45 }
  0x8a   : > { %v229_v59 = vsel %vm226_vm14, %v228_v52, %v224_v55 }
  0xeb   : > { %v185_v29 = vpop.xlane.xlu0 %184 }
  0xec   : > { %v186_v30 = vsub.f32 %v181_v24, %v185_v29  ;;  %v243_v31 = vsub.f32 0.0, %v185_v29 }
  0xee   : > { %vm388_vm9 = vcmp.lt.s32.totalorder %v186_v30, 0  ;;  %v389_v33 = vceil.f32 %v186_v30  ;;  %v390_v34 = vfloor.f32 %v186_v30  ;;  %vm395_vm10 = vcmp.lt.s32.totalorder %v243_v31, 0 }
  0xef   : > { %v396_v35 = vceil.f32 %v243_v31  ;;  %v397_v36 = vfloor.f32 %v243_v31 }
  0xf0   : > { %v391_v37 = vsel %vm388_vm9, %v389_v33, %v390_v34 }
  0xf1   : > { %v392_v39 = vcvt.f32.s32 %v391_v37  ;;  %v398_v40 = vsel %vm395_vm10, %v396_v35, %v397_v36 }
  0xf2   : > { %v399_v41 = vcvt.f32.s32 %v398_v40 }
  0xf3   : > { %v207_v42 = vshra.s32 %v392_v39, 1  ;;  %v209_v48 = vshra.s32 %v392_v39, 4 }
  0xf4   : > { %v245_v44 = vshra.s32 %v399_v41, 1  ;;  %v247_v50 = vshra.s32 %v399_v41, 4 }
  0xf5   : > { %v208_v47 = vadd.s32 %v392_v39, %v207_v42 }
  0xf6   : > { %v246_v49 = vadd.s32 %v399_v41, %v245_v44 }
  0xf7   : > { %v210_v51 = vsub.s32 %v208_v47, %v209_v48 }
  0xf8   : > { %v248_v53 = vsub.s32 %v246_v49, %v247_v50 }
  0xf9   : > { %v211_v54 = vcvt.s32.f32 %v210_v51 }
  0xfa   : > { %v249_v57 = vcvt.s32.f32 %v248_v53 }
  0xfb   : > { %v214_v58 = vmax.f32 %v211_v54, %v213_v56 }
  0xfc   : > { %v250_v60 = vmax.f32 %v249_v57, %v213_v56 }
  0xfd   : > { %v230_v61 = vmul.f32 %v229_v59, %v214_v58 }
  0xfe   : > { %v251_v62 = vmul.f32 %v250_v60, %v229_v59 }
  0xff   : > { %v231_v63 = vfloor.f32 %v230_v61 }
 0x100   : > { %v252_v0 = vfloor.f32 %v251_v62 }
 0x101   : > { %v232_v1 = vmul.f32 %v231_v63, %v678_v26  ;;  %v394_v2 = vcvt.f32.s32 %v231_v63 }
 0x102   : > { %v253_v3 = vmul.f32 %v252_v0, %v678_v26  ;;  %v257_v4 = vsub.f32 23.0, %v252_v0 }
 0x103   : > { %v233_v5 = vsub.f32 %v214_v58, %v232_v1  ;;  %v237_v6 = vsub.s32 150, %v394_v2 }
 0x104   : > { %v254_v7 = vsub.f32 %v250_v60, %v253_v3  ;;  %452 = vpow2.f32 %v257_v4 }
 0x105   : > { %v234_v8 = vmul.f32 0.5, %v233_v5  ;;  %v238_v11 = vshll.u32 %v237_v6, 23 }
 0x106   : > { %v255_v9 = vmul.f32 0.5, %v254_v7 }
 0x107   : > { %v235_v10 = vsub.f32 %v234_v8, %v678_v26 }
 0x108   : > { %v256_v12 = vsub.f32 %v255_v9, %v678_v26 }
 0x109   : > { %v240_v13 = vmul.f32 %v238_v11, %v235_v10 }
 0x10a   : > { %v453_v14 = vpop.eup %452 }
 0x10b   : > { %v259_v15 = vmul.f32 %v453_v14, %v256_v12  ;;  %v241_v16 = vfloor.f32 %v240_v13 }
 0x10d   : > { %v260_v17 = vfloor.f32 %v259_v15  ;;  %v242_v18 = vmax.f32 %v241_v16, 0.0 }
 0x10f   : > { %v261_v19 = vmax.f32 %v260_v17, 0.0 }
 0x111   : > { %v262_v20 = vadd.f32 %v261_v19, %v242_v18 }
 0x113   : > { %v263_v21 = vmin.f32 %v262_v20, 2.1474836e+09 }
 0x115   : > { %454 = vrcp.f32 %v263_v21  ;;  %v275_v27 = vand.u32 2147483648, %v263_v21  ;;  %v273_v29 = vand.u32 2147483647, %v263_v21  ;;  %vm269_vm0 = vweird.f32 %v263_v21 }
 0x117   : > { %v276_v30 = vor.u32 1.1754944e-38, %v275_v27  ;;  %vm274_vm2 = vcmp.eq.f32.partialorder %v273_v29, 8.507059e+37 }
 0x11b   : > { %v455_v23 = vpop.eup %454 }
 0x11c   : > { %v265_v24 = vmul.f32 %v455_v23, %v263_v21  ;;  %vm270_vm15 = vweird.f32 %v455_v23 }
 0x11d   : > { %vm271_vm1 = vmor %vm269_vm0, %vm270_vm15 }
 0x11e   : > { %v266_v25 = vsub.f32 1.0, %v265_v24 }
 0x120   : > { %v267_v28 = vmul.f32 %v455_v23, %v266_v25 }
 0x122   : > { %v268_v26 = vadd.f32 %v455_v23, %v267_v28 }
 0x124   : > { %v272_v31 = vsel %vm271_vm1, %v455_v23, %v268_v26 }
 0x125   : > { %v277_v32 = vsel %vm274_vm2, %v276_v30, %v272_v31 }
 0x126   : > { %v278_v33 = vmul.f32 2.1474836e+09, %v277_v32 }
 0x128   : > { %v279_v34 = vfloor.f32 %v278_v33 }
 0x12a   : > { %v280_v35 = vmul.f32 %v279_v34, %v242_v18 }
 0x12c   : > { %v281_v36 = vmul.f32 5.9604645e-08, %v280_v35 }
 0x12e   : > { %v282_v37 = vfloor.f32 %v281_v36 }
 0x130   : > { %v283_v38 = vmul.f32 %v282_v37, %v671_v22 }
 0x132   : > { %v284_v39 = vmul.f32 0.0078125, %v283_v38 }
 0x134   : > { %285 = vst.msk [vmem:[%s161_s9] sm:$0xff] %vm182_vm8, %v284_v39 }
 0x135   : > { %513 = shalt.err (!%p510_p4)
}
 0x136   : > { %402 = dma.vmem_to_hbm [thread:$0]  (%p622_p11), %s300_s10, 128, %s302_s15, %s287_s0  }
 0x137 PF: > { %s313_s20 = sand.u32 1, %s540_s11   ;;  %p735_p7 = scmp.ge.s32.totalorder %s552_s14, 2 }
 0x138   : > { %s314_s28 = scalar_lea.sflag [#allocation5], %s313_s20 }
 0x139   : > { %p409_p5 = pnand %p735_p7, %p626_p12 }
 0x13b   : > { %p410_p8 = pneg %p409_p5 }
 0x13d   : > { %535 = dma.done.wait (%p410_p8), %s314_s28, 128  }
 0x13e   : > { %537 = vsyncadd (%p410_p8), %s314_s28, 4294967168  ;;  %p16_p10 = scmp.ge.s32.totalorder %s597_s16, 4   ;;  %s736_s11 = smov %s544_s12 }
 0x13f   : > { %s737_s12 = smov %s548_s13  ;;  %s738_s13 = smov %s609_s19 }
 0x140   : > { %s739_s14 = smov %s597_s16  ;;  %18 = sbr.rel (!%p16_p10) target bundleno = 7 (0x7), region = 73 }
 0x145   :  { %320 = vsyncpa [#allocation4], 1 }
 0x146   :  { %322 = vsyncpa [#allocation4 + $0x1], 1 }
 0x147   :  { %323 = vsyncpa [#allocation5], 1 }
 0x148   :  { %325 = vsyncpa [#allocation5 + $0x1], 1 }

</bundles_post_ra>
